<compile_context>
chip_gen: v7x
topology: tpu7x:2x2x1
jax: 0.10.0
libtpu: 0.0.40
codegen_flags: <defaults>
</compile_context>

<pallas_src>
import jax
import jax.numpy as jnp
from jax.experimental import pallas as pl
from jax.experimental.pallas import tpu as pltpu


def _make_kernel(C, H, W, nb):
    HW = H * W
    inv_c = 1.0 / float(C)

    def kernel(w_ref, x_ref, o_ref, sum_ref, max_ref):
        # w_ref  : SMEM (18,) f32 (scalar prefetch) — [in_ch(2), kh(3), kw(3)]
        # x_ref  : VMEM (nb, ct, HW) — one channel tile of nb batch elements
        # o_ref  : VMEM (nb, 1, HW)  — attention map (written on last C step)
        # sum/max_ref : VMEM (nb, HW) f32 running channel-sum / channel-max
        c = pl.program_id(1)

        @pl.when(c == 0)
        def _():
            sum_ref[...] = jnp.zeros_like(sum_ref)
            max_ref[...] = jnp.full_like(max_ref, -jnp.inf)

        xt = x_ref[...]                                        # storage dtype
        # Widen only through the reduction (no full-tile f32 temp); max is exact
        # in the storage dtype, cast once at (nb, HW).
        sum_ref[...] = sum_ref[...] + jnp.sum(xt, axis=1, dtype=jnp.float32)
        max_ref[...] = jnp.maximum(max_ref[...],
                                   jnp.max(xt, axis=1).astype(jnp.float32))

        @pl.when(c == pl.num_programs(1) - 1)
        def _():
            avg = sum_ref[...] * inv_c                         # (nb, HW)
            mx = max_ref[...]                                  # (nb, HW)

            # Border-validity masks for the 3x3 "same" conv on the flat map.
            flat = jax.lax.broadcasted_iota(jnp.int32, (nb, HW), 1)
            col = flat % W
            row_ok = {-1: flat >= W, 0: None, 1: flat < (H - 1) * W}
            col_ok = {-1: col >= 1, 0: None, 1: col <= W - 2}

            acc = jnp.zeros((nb, HW), jnp.float32)
            for ci, feat in enumerate((avg, mx)):              # 2 conv in-channels
                for kh in range(3):
                    dh = kh - 1
                    for kw in range(3):
                        dw = kw - 1
                        off = dh * W + dw
                        if off == 0:
                            tap = feat
                        else:
                            # tap[f] = feat[f + off]  (wrap-around masked below)
                            tap = pltpu.roll(feat, shift=(-off) % HW, axis=1)
                        m = row_ok[dh]
                        cm = col_ok[dw]
                        if cm is not None:
                            m = cm if m is None else (m & cm)
                        if m is not None:
                            tap = jnp.where(m, tap, 0.0)
                        acc = acc + w_ref[ci * 9 + kh * 3 + kw] * tap

            o_ref[...] = jax.nn.sigmoid(acc).reshape(nb, 1, HW).astype(o_ref.dtype)

    return kernel


def _tpu_params():
    """(vmem_capacity_bytes, num_tensorcores_per_chip) with safe fallbacks."""
    vmem_cap = 128 << 20
    num_tc = 1
    try:
        info = pltpu.get_tpu_info()
        vmem_cap = int(getattr(info, "vmem_capacity_bytes", vmem_cap))
    except Exception:
        pass
    try:
        kind = jax.devices()[0].device_kind.lower()
        if "v7" in kind:
            num_tc = 2
    except Exception:
        pass
    if vmem_cap <= (64 << 20):      # 64 MiB VMEM generation => 2 TCs per chip
        num_tc = max(num_tc, 2)
    return vmem_cap, num_tc


def _block_budget(vmem_cap):
    """Per-step streamed-x budget: big blocks on 128 MiB parts, 12-16 MiB on v7x."""
    if vmem_cap >= (128 << 20):
        return 20 << 20
    return 14 << 20


def _choose_tiles(N, C, HW, itemsize, budget_bytes, num_tc):
    """Pick (nb, ct): nb | N, ct | C, ct a multiple of the dtype sublane tile
    (or == C), one streamed x block <= budget when possible, and >= 2 steps on
    the parallel axis when the chip has 2 TensorCores."""
    sub = {4: 8, 2: 16, 1: 32}.get(itemsize, 8)

    def ct_ok(d):
        return d == C or d % sub == 0

    max_nb = N
    if num_tc >= 2 and N >= 2:
        max_nb = max(N // 2, 1)          # keep >= 2 parallel grid steps

    nb_divs = [d for d in range(1, N + 1) if N % d == 0 and d <= max_nb]

    # Preferred: keep all channels per step (ct = C), largest nb that fits.
    per_batch_full = C * HW * itemsize
    fit_nb = [d for d in nb_divs if d * per_batch_full <= budget_bytes]
    if fit_nb:
        return max(fit_nb), C

    # Channel tiling needed: keep nb sublane-dense (largest divisor of N <= 8).
    nb_pref = [d for d in nb_divs if d <= 8]
    nb = max(nb_pref) if nb_pref else 1
    ct_divs = [d for d in range(1, C + 1) if C % d == 0 and ct_ok(d)]

    fit_ct = [d for d in ct_divs if d * nb * HW * itemsize <= budget_bytes]
    if fit_ct:
        return nb, max(fit_ct)

    fit_ct = [d for d in ct_divs if d * HW * itemsize <= budget_bytes]
    if fit_ct:
        return 1, max(fit_ct)

    # Last resort (enormous HW): smallest *valid* ct, possibly over budget but
    # never violating the (sublane, 128) block constraint.
    return 1, min(ct_divs)


def spatial_attention(x, w):
    """x: (N, C, H, W); w: (1, 2, 3, 3) conv weight (OIHW, bias-free)."""
    N, C, H, W = x.shape
    HW = H * W
    itemsize = jnp.dtype(x.dtype).itemsize

    vmem_cap, num_tc = _tpu_params()
    budget = _block_budget(vmem_cap)
    nb, ct = _choose_tiles(N, C, HW, itemsize, budget, num_tc)
    grid = (N // nb, C // ct)

    x_flat = x.reshape(N, C, HW)                               # lane-dense last dim
    w_flat = w.reshape(-1).astype(jnp.float32)                 # (18,) -> SMEM prefetch

    # VMEM budget: double-buffered input/output + f32 scratch, with 2x margin,
    # capped at 3/4 of physical VMEM (≈96 MiB on v5e/v6e, ≈48 MiB on v7x).
    x_blk = nb * ct * HW * itemsize
    o_blk = nb * HW * itemsize
    scratch = 2 * nb * HW * 4
    need = 2 * x_blk + 2 * o_blk + scratch
    cap = int(vmem_cap * 3 // 4)
    vmem_limit = int(min(max(2 * need, 16 << 20), cap))

    out = pl.pallas_call(
        _make_kernel(C, H, W, nb),
        out_shape=jax.ShapeDtypeStruct((N, 1, HW), x.dtype),
        grid_spec=pltpu.PrefetchScalarGridSpec(
            num_scalar_prefetch=1,                                  # conv weight
            grid=grid,
            in_specs=[pl.BlockSpec((nb, ct, HW), lambda b, c, w_ref: (b, c, 0))],
            out_specs=pl.BlockSpec((nb, 1, HW), lambda b, c, w_ref: (b, 0, 0)),
            scratch_shapes=[
                pltpu.VMEM((nb, HW), jnp.float32),   # running channel sum
                pltpu.VMEM((nb, HW), jnp.float32),   # running channel max
            ],
        ),
        compiler_params=pltpu.CompilerParams(
            dimension_semantics=("parallel", "arbitrary"),
            vmem_limit_bytes=vmem_limit,
        ),
    )(w_flat, x_flat)

    return out.reshape(N, 1, H, W)


def reference(x, w):
    avg = jnp.mean(x, axis=1, keepdims=True)
    mx = jnp.max(x, axis=1, keepdims=True)
    cat = jnp.concatenate([avg, mx], axis=1)
    out = jax.lax.conv_general_dilated(
        cat, w, window_strides=(1, 1), padding=((1, 1), (1, 1)),
        dimension_numbers=("NCHW", "OIHW", "NCHW"))
    return jax.nn.sigmoid(out)


if __name__ == "__main__":
    key = jax.random.PRNGKey(0)
    kx, kw = jax.random.split(key)
    # Small shapes consistent with the module: N=2, C=4, H=W=16.
    x = jax.random.normal(kx, (2, 4, 16, 16), dtype=jnp.float32)
    # Deterministic synthetic conv weight, shape (out=1, in=2, 3, 3) like nn.Conv2d(2,1,3).
    w = jax.random.normal(kw, (1, 2, 3, 3), dtype=jnp.float32) * 0.2

    out = jax.block_until_ready(spatial_attention(x, w))
    ref = reference(x, w)

    assert out.shape == (2, 1, 16, 16), out.shape
    assert jnp.allclose(out, ref, atol=1e-5, rtol=1e-5), (
        float(jnp.max(jnp.abs(out - ref))))
    print("KERNEL_OK")
</pallas_src>

<mosaic_0001>
module attributes {stable_mosaic.version = 11 : i64} {
  func.func @kernel(%arg0: i32, %arg1: i32, %arg2: memref<18xf32, #tpu.memory_space<smem>>, %arg3: memref<2x4x256xf32, #tpu.memory_space<vmem>>, %arg4: memref<2x1x256xf32, #tpu.memory_space<vmem>>, %arg5: memref<2x256xf32, #tpu.memory_space<vmem>>, %arg6: memref<2x256xf32, #tpu.memory_space<vmem>>) attributes {dimension_semantics = [#tpu.dimension_semantics<parallel>, #tpu.dimension_semantics<arbitrary>], iteration_bounds = array<i64: 1, 1>, scalar_prefetch = 1 : i64, scratch_operands = 2 : i64, tpu.core_type = #tpu.core_type<tc>, window_params = [{transform_indices = @transform_0, window_bounds = array<i64: 2, 4, 256>}, {transform_indices = @transform_1, window_bounds = array<i64: 2, 1, 256>}]} {
    %c0_i32 = arith.constant 0 : i32
    %0 = arith.cmpi eq, %arg1, %c0_i32 : i32
    %1 = arith.extui %0 : i1 to i32
    %c0_i32_0 = arith.constant 0 : i32
    %2 = arith.cmpi ne, %1, %c0_i32_0 : i32
    scf.if %2 {
      %cst_14 = arith.constant 0.000000e+00 : f32
      %15 = vector.broadcast %cst_14 : f32 to vector<2x256xf32>
      %c0_15 = arith.constant 0 : index
      %c0_16 = arith.constant 0 : index
      %16 = vector.load %arg5[%c0_15, %c0_16] : memref<2x256xf32, #tpu.memory_space<vmem>>, vector<2x256xf32>
      tpu.vector_store %arg5[%c0_15, %c0_16], %15 {strides = array<i32>} : memref<2x256xf32, #tpu.memory_space<vmem>>, vector<2x256xf32>,
      %cst_17 = arith.constant 0xFF800000 : f32
      %17 = vector.broadcast %cst_17 : f32 to vector<2x256xf32>
      %c0_18 = arith.constant 0 : index
      %c0_19 = arith.constant 0 : index
      %18 = vector.load %arg6[%c0_18, %c0_19] : memref<2x256xf32, #tpu.memory_space<vmem>>, vector<2x256xf32>
      tpu.vector_store %arg6[%c0_18, %c0_19], %17 {strides = array<i32>} : memref<2x256xf32, #tpu.memory_space<vmem>>, vector<2x256xf32>,
    } else {
    }
    %c0 = arith.constant 0 : index
    %c0_1 = arith.constant 0 : index
    %c0_2 = arith.constant 0 : index
    %3 = vector.load %arg3[%c0, %c0_1, %c0_2] : memref<2x4x256xf32, #tpu.memory_space<vmem>>, vector<2x4x256xf32>
    %c0_3 = arith.constant 0 : index
    %c0_4 = arith.constant 0 : index
    %4 = vector.load %arg5[%c0_3, %c0_4] : memref<2x256xf32, #tpu.memory_space<vmem>>, vector<2x256xf32>
    %cst = arith.constant dense<0.000000e+00> : vector<2x256xf32>
    %5 = vector.multi_reduction <add>, %3, %cst [1] : vector<2x4x256xf32> to vector<2x256xf32>
    %6 = arith.addf %4, %5 : vector<2x256xf32>
    %c0_5 = arith.constant 0 : index
    %c0_6 = arith.constant 0 : index
    %7 = vector.load %arg5[%c0_5, %c0_6] : memref<2x256xf32, #tpu.memory_space<vmem>>, vector<2x256xf32>
    tpu.vector_store %arg5[%c0_5, %c0_6], %6 {strides = array<i32>} : memref<2x256xf32, #tpu.memory_space<vmem>>, vector<2x256xf32>,
    %c0_7 = arith.constant 0 : index
    %c0_8 = arith.constant 0 : index
    %8 = vector.load %arg6[%c0_7, %c0_8] : memref<2x256xf32, #tpu.memory_space<vmem>>, vector<2x256xf32>
    %cst_9 = arith.constant dense<0xFF800000> : vector<2x256xf32>
    %9 = vector.multi_reduction <maximumf>, %3, %cst_9 [1] : vector<2x4x256xf32> to vector<2x256xf32>
    %10 = arith.maximumf %8, %9 : vector<2x256xf32>
    %c0_10 = arith.constant 0 : index
    %c0_11 = arith.constant 0 : index
    %11 = vector.load %arg6[%c0_10, %c0_11] : memref<2x256xf32, #tpu.memory_space<vmem>>, vector<2x256xf32>
    tpu.vector_store %arg6[%c0_10, %c0_11], %10 {strides = array<i32>} : memref<2x256xf32, #tpu.memory_space<vmem>>, vector<2x256xf32>,
    %c0_i32_12 = arith.constant 0 : i32
    %12 = arith.cmpi eq, %arg1, %c0_i32_12 : i32
    %13 = arith.extui %12 : i1 to i32
    %c0_i32_13 = arith.constant 0 : i32
    %14 = arith.cmpi ne, %13, %c0_i32_13 : i32
    scf.if %14 {
      %c0_14 = arith.constant 0 : index
      %c0_15 = arith.constant 0 : index
      %15 = vector.load %arg5[%c0_14, %c0_15] : memref<2x256xf32, #tpu.memory_space<vmem>>, vector<2x256xf32>
      %cst_16 = arith.constant 2.500000e-01 : f32
      %16 = vector.broadcast %cst_16 : f32 to vector<2x256xf32>
      %17 = arith.mulf %15, %16 : vector<2x256xf32>
      %c0_17 = arith.constant 0 : index
      %c0_18 = arith.constant 0 : index
      %18 = vector.load %arg6[%c0_17, %c0_18] : memref<2x256xf32, #tpu.memory_space<vmem>>, vector<2x256xf32>
      %19 = tpu.iota {dimensions = array<i32: 1>} : vector<2x256xi32>
      %c16_i32 = arith.constant 16 : i32
      %c0_i32_19 = arith.constant 0 : i32
      %20 = arith.cmpi eq, %c16_i32, %c0_i32_19 : i32
      %c1_i32 = arith.constant 1 : i32
      %21 = arith.select %20, %c1_i32, %c16_i32 : i32
      %22 = vector.broadcast %21 : i32 to vector<2x256xi32>
      %23 = arith.remsi %19, %22 : vector<2x256xi32>
      %c0_i32_20 = arith.constant 0 : i32
      %24 = vector.broadcast %c0_i32_20 : i32 to vector<2x256xi32>
      %25 = arith.cmpi ne, %23, %24 : vector<2x256xi32>
      %c0_i32_21 = arith.constant 0 : i32
      %26 = vector.broadcast %c0_i32_21 : i32 to vector<2x256xi32>
      %27 = arith.cmpi slt, %23, %26 : vector<2x256xi32>
      %c0_i32_22 = arith.constant 0 : i32
      %28 = arith.cmpi slt, %21, %c0_i32_22 : i32
      %29 = vector.broadcast %28 : i1 to vector<2x256xi1>
      %30 = vector.broadcast %29 : vector<2x256xi1> to vector<2x256xi1>
      %31 = arith.xori %27, %30 : vector<2x256xi1>
      %32 = arith.andi %31, %25 : vector<2x256xi1>
      %33 = vector.broadcast %21 : i32 to vector<2x256xi32>
      %34 = arith.addi %23, %33 : vector<2x256xi32>
      %35 = arith.select %32, %34, %23 : vector<2x256xi1>, vector<2x256xi32>
      %c16_i32_23 = arith.constant 16 : i32
      %36 = vector.broadcast %c16_i32_23 : i32 to vector<2x256xi32>
      %37 = arith.cmpi sge, %19, %36 : vector<2x256xi32>
      %c240_i32 = arith.constant 240 : i32
      %38 = vector.broadcast %c240_i32 : i32 to vector<2x256xi32>
      %39 = arith.cmpi slt, %19, %38 : vector<2x256xi32>
      %c1_i32_24 = arith.constant 1 : i32
      %40 = vector.broadcast %c1_i32_24 : i32 to vector<2x256xi32>
      %41 = arith.cmpi sge, %35, %40 : vector<2x256xi32>
      %c14_i32 = arith.constant 14 : i32
      %42 = vector.broadcast %c14_i32 : i32 to vector<2x256xi32>
      %43 = arith.cmpi sle, %35, %42 : vector<2x256xi32>
      %cst_25 = arith.constant 0.000000e+00 : f32
      %44 = vector.broadcast %cst_25 : f32 to vector<2x256xf32>
      %c17_i32 = arith.constant 17 : i32
      %45 = tpu.dynamic_rotate %17 by %c17_i32 dim 1 : vector<2x256xf32>, i32 -> vector<2x256xf32>
      %46 = arith.andi %37, %41 : vector<2x256xi1>
      %cst_26 = arith.constant 0.000000e+00 : f32
      %47 = vector.broadcast %cst_26 : f32 to vector<2x256xf32>
      %48 = arith.select %46, %45, %47 : vector<2x256xi1>, vector<2x256xf32>
      %c0_27 = arith.constant 0 : index
      %49 = memref.load %arg2[%c0_27] : memref<18xf32, #tpu.memory_space<smem>>
      %50 = vector.broadcast %49 : f32 to vector<2x256xf32>
      %51 = arith.mulf %50, %48 : vector<2x256xf32>
      %52 = arith.addf %44, %51 : vector<2x256xf32>
      %c16_i32_28 = arith.constant 16 : i32
      %53 = tpu.dynamic_rotate %17 by %c16_i32_28 dim 1 : vector<2x256xf32>, i32 -> vector<2x256xf32>
      %cst_29 = arith.constant 0.000000e+00 : f32
      %54 = vector.broadcast %cst_29 : f32 to vector<2x256xf32>
      %55 = arith.select %37, %53, %54 : vector<2x256xi1>, vector<2x256xf32>
      %c1 = arith.constant 1 : index
      %56 = memref.load %arg2[%c1] : memref<18xf32, #tpu.memory_space<smem>>
      %57 = vector.broadcast %56 : f32 to vector<2x256xf32>
      %58 = arith.mulf %57, %55 : vector<2x256xf32>
      %59 = arith.addf %52, %58 : vector<2x256xf32>
      %c15_i32 = arith.constant 15 : i32
      %60 = tpu.dynamic_rotate %17 by %c15_i32 dim 1 : vector<2x256xf32>, i32 -> vector<2x256xf32>
      %61 = arith.andi %37, %43 : vector<2x256xi1>
      %cst_30 = arith.constant 0.000000e+00 : f32
      %62 = vector.broadcast %cst_30 : f32 to vector<2x256xf32>
      %63 = arith.select %61, %60, %62 : vector<2x256xi1>, vector<2x256xf32>
      %c2 = arith.constant 2 : index
      %64 = memref.load %arg2[%c2] : memref<18xf32, #tpu.memory_space<smem>>
      %65 = vector.broadcast %64 : f32 to vector<2x256xf32>
      %66 = arith.mulf %65, %63 : vector<2x256xf32>
      %67 = arith.addf %59, %66 : vector<2x256xf32>
      %c1_i32_31 = arith.constant 1 : i32
      %68 = tpu.dynamic_rotate %17 by %c1_i32_31 dim 1 : vector<2x256xf32>, i32 -> vector<2x256xf32>
      %cst_32 = arith.constant 0.000000e+00 : f32
      %69 = vector.broadcast %cst_32 : f32 to vector<2x256xf32>
      %70 = arith.select %41, %68, %69 : vector<2x256xi1>, vector<2x256xf32>
      %c3 = arith.constant 3 : index
      %71 = memref.load %arg2[%c3] : memref<18xf32, #tpu.memory_space<smem>>
      %72 = vector.broadcast %71 : f32 to vector<2x256xf32>
      %73 = arith.mulf %72, %70 : vector<2x256xf32>
      %74 = arith.addf %67, %73 : vector<2x256xf32>
      %c4 = arith.constant 4 : index
      %75 = memref.load %arg2[%c4] : memref<18xf32, #tpu.memory_space<smem>>
      %76 = vector.broadcast %75 : f32 to vector<2x256xf32>
      %77 = arith.mulf %76, %17 : vector<2x256xf32>
      %78 = arith.addf %74, %77 : vector<2x256xf32>
      %c255_i32 = arith.constant 255 : i32
      %79 = tpu.dynamic_rotate %17 by %c255_i32 dim 1 : vector<2x256xf32>, i32 -> vector<2x256xf32>
      %cst_33 = arith.constant 0.000000e+00 : f32
      %80 = vector.broadcast %cst_33 : f32 to vector<2x256xf32>
      %81 = arith.select %43, %79, %80 : vector<2x256xi1>, vector<2x256xf32>
      %c5 = arith.constant 5 : index
      %82 = memref.load %arg2[%c5] : memref<18xf32, #tpu.memory_space<smem>>
      %83 = vector.broadcast %82 : f32 to vector<2x256xf32>
      %84 = arith.mulf %83, %81 : vector<2x256xf32>
      %85 = arith.addf %78, %84 : vector<2x256xf32>
      %c241_i32 = arith.constant 241 : i32
      %86 = tpu.dynamic_rotate %17 by %c241_i32 dim 1 : vector<2x256xf32>, i32 -> vector<2x256xf32>
      %87 = arith.andi %39, %41 : vector<2x256xi1>
      %cst_34 = arith.constant 0.000000e+00 : f32
      %88 = vector.broadcast %cst_34 : f32 to vector<2x256xf32>
      %89 = arith.select %87, %86, %88 : vector<2x256xi1>, vector<2x256xf32>
      %c6 = arith.constant 6 : index
      %90 = memref.load %arg2[%c6] : memref<18xf32, #tpu.memory_space<smem>>
      %91 = vector.broadcast %90 : f32 to vector<2x256xf32>
      %92 = arith.mulf %91, %89 : vector<2x256xf32>
      %93 = arith.addf %85, %92 : vector<2x256xf32>
      %c240_i32_35 = arith.constant 240 : i32
      %94 = tpu.dynamic_rotate %17 by %c240_i32_35 dim 1 : vector<2x256xf32>, i32 -> vector<2x256xf32>
      %cst_36 = arith.constant 0.000000e+00 : f32
      %95 = vector.broadcast %cst_36 : f32 to vector<2x256xf32>
      %96 = arith.select %39, %94, %95 : vector<2x256xi1>, vector<2x256xf32>
      %c7 = arith.constant 7 : index
      %97 = memref.load %arg2[%c7] : memref<18xf32, #tpu.memory_space<smem>>
      %98 = vector.broadcast %97 : f32 to vector<2x256xf32>
      %99 = arith.mulf %98, %96 : vector<2x256xf32>
      %100 = arith.addf %93, %99 : vector<2x256xf32>
      %c239_i32 = arith.constant 239 : i32
      %101 = tpu.dynamic_rotate %17 by %c239_i32 dim 1 : vector<2x256xf32>, i32 -> vector<2x256xf32>
      %102 = arith.andi %39, %43 : vector<2x256xi1>
      %cst_37 = arith.constant 0.000000e+00 : f32
      %103 = vector.broadcast %cst_37 : f32 to vector<2x256xf32>
      %104 = arith.select %102, %101, %103 : vector<2x256xi1>, vector<2x256xf32>
      %c8 = arith.constant 8 : index
      %105 = memref.load %arg2[%c8] : memref<18xf32, #tpu.memory_space<smem>>
      %106 = vector.broadcast %105 : f32 to vector<2x256xf32>
      %107 = arith.mulf %106, %104 : vector<2x256xf32>
      %108 = arith.addf %100, %107 : vector<2x256xf32>
      %c17_i32_38 = arith.constant 17 : i32
      %109 = tpu.dynamic_rotate %18 by %c17_i32_38 dim 1 : vector<2x256xf32>, i32 -> vector<2x256xf32>
      %110 = arith.andi %37, %41 : vector<2x256xi1>
      %cst_39 = arith.constant 0.000000e+00 : f32
      %111 = vector.broadcast %cst_39 : f32 to vector<2x256xf32>
      %112 = arith.select %110, %109, %111 : vector<2x256xi1>, vector<2x256xf32>
      %c9 = arith.constant 9 : index
      %113 = memref.load %arg2[%c9] : memref<18xf32, #tpu.memory_space<smem>>
      %114 = vector.broadcast %113 : f32 to vector<2x256xf32>
      %115 = arith.mulf %114, %112 : vector<2x256xf32>
      %116 = arith.addf %108, %115 : vector<2x256xf32>
      %c16_i32_40 = arith.constant 16 : i32
      %117 = tpu.dynamic_rotate %18 by %c16_i32_40 dim 1 : vector<2x256xf32>, i32 -> vector<2x256xf32>
      %cst_41 = arith.constant 0.000000e+00 : f32
      %118 = vector.broadcast %cst_41 : f32 to vector<2x256xf32>
      %119 = arith.select %37, %117, %118 : vector<2x256xi1>, vector<2x256xf32>
      %c10 = arith.constant 10 : index
      %120 = memref.load %arg2[%c10] : memref<18xf32, #tpu.memory_space<smem>>
      %121 = vector.broadcast %120 : f32 to vector<2x256xf32>
      %122 = arith.mulf %121, %119 : vector<2x256xf32>
      %123 = arith.addf %116, %122 : vector<2x256xf32>
      %c15_i32_42 = arith.constant 15 : i32
      %124 = tpu.dynamic_rotate %18 by %c15_i32_42 dim 1 : vector<2x256xf32>, i32 -> vector<2x256xf32>
      %125 = arith.andi %37, %43 : vector<2x256xi1>
      %cst_43 = arith.constant 0.000000e+00 : f32
      %126 = vector.broadcast %cst_43 : f32 to vector<2x256xf32>
      %127 = arith.select %125, %124, %126 : vector<2x256xi1>, vector<2x256xf32>
      %c11 = arith.constant 11 : index
      %128 = memref.load %arg2[%c11] : memref<18xf32, #tpu.memory_space<smem>>
      %129 = vector.broadcast %128 : f32 to vector<2x256xf32>
      %130 = arith.mulf %129, %127 : vector<2x256xf32>
      %131 = arith.addf %123, %130 : vector<2x256xf32>
      %c1_i32_44 = arith.constant 1 : i32
      %132 = tpu.dynamic_rotate %18 by %c1_i32_44 dim 1 : vector<2x256xf32>, i32 -> vector<2x256xf32>
      %cst_45 = arith.constant 0.000000e+00 : f32
      %133 = vector.broadcast %cst_45 : f32 to vector<2x256xf32>
      %134 = arith.select %41, %132, %133 : vector<2x256xi1>, vector<2x256xf32>
      %c12 = arith.constant 12 : index
      %135 = memref.load %arg2[%c12] : memref<18xf32, #tpu.memory_space<smem>>
      %136 = vector.broadcast %135 : f32 to vector<2x256xf32>
      %137 = arith.mulf %136, %134 : vector<2x256xf32>
      %138 = arith.addf %131, %137 : vector<2x256xf32>
      %c13 = arith.constant 13 : index
      %139 = memref.load %arg2[%c13] : memref<18xf32, #tpu.memory_space<smem>>
      %140 = vector.broadcast %139 : f32 to vector<2x256xf32>
      %141 = arith.mulf %140, %18 : vector<2x256xf32>
      %142 = arith.addf %138, %141 : vector<2x256xf32>
      %c255_i32_46 = arith.constant 255 : i32
      %143 = tpu.dynamic_rotate %18 by %c255_i32_46 dim 1 : vector<2x256xf32>, i32 -> vector<2x256xf32>
      %cst_47 = arith.constant 0.000000e+00 : f32
      %144 = vector.broadcast %cst_47 : f32 to vector<2x256xf32>
      %145 = arith.select %43, %143, %144 : vector<2x256xi1>, vector<2x256xf32>
      %c14 = arith.constant 14 : index
      %146 = memref.load %arg2[%c14] : memref<18xf32, #tpu.memory_space<smem>>
      %147 = vector.broadcast %146 : f32 to vector<2x256xf32>
      %148 = arith.mulf %147, %145 : vector<2x256xf32>
      %149 = arith.addf %142, %148 : vector<2x256xf32>
      %c241_i32_48 = arith.constant 241 : i32
      %150 = tpu.dynamic_rotate %18 by %c241_i32_48 dim 1 : vector<2x256xf32>, i32 -> vector<2x256xf32>
      %151 = arith.andi %39, %41 : vector<2x256xi1>
      %cst_49 = arith.constant 0.000000e+00 : f32
      %152 = vector.broadcast %cst_49 : f32 to vector<2x256xf32>
      %153 = arith.select %151, %150, %152 : vector<2x256xi1>, vector<2x256xf32>
      %c15 = arith.constant 15 : index
      %154 = memref.load %arg2[%c15] : memref<18xf32, #tpu.memory_space<smem>>
      %155 = vector.broadcast %154 : f32 to vector<2x256xf32>
      %156 = arith.mulf %155, %153 : vector<2x256xf32>
      %157 = arith.addf %149, %156 : vector<2x256xf32>
      %c240_i32_50 = arith.constant 240 : i32
      %158 = tpu.dynamic_rotate %18 by %c240_i32_50 dim 1 : vector<2x256xf32>, i32 -> vector<2x256xf32>
      %cst_51 = arith.constant 0.000000e+00 : f32
      %159 = vector.broadcast %cst_51 : f32 to vector<2x256xf32>
      %160 = arith.select %39, %158, %159 : vector<2x256xi1>, vector<2x256xf32>
      %c16 = arith.constant 16 : index
      %161 = memref.load %arg2[%c16] : memref<18xf32, #tpu.memory_space<smem>>
      %162 = vector.broadcast %161 : f32 to vector<2x256xf32>
      %163 = arith.mulf %162, %160 : vector<2x256xf32>
      %164 = arith.addf %157, %163 : vector<2x256xf32>
      %c239_i32_52 = arith.constant 239 : i32
      %165 = tpu.dynamic_rotate %18 by %c239_i32_52 dim 1 : vector<2x256xf32>, i32 -> vector<2x256xf32>
      %166 = arith.andi %39, %43 : vector<2x256xi1>
      %cst_53 = arith.constant 0.000000e+00 : f32
      %167 = vector.broadcast %cst_53 : f32 to vector<2x256xf32>
      %168 = arith.select %166, %165, %167 : vector<2x256xi1>, vector<2x256xf32>
      %c17 = arith.constant 17 : index
      %169 = memref.load %arg2[%c17] : memref<18xf32, #tpu.memory_space<smem>>
      %170 = vector.broadcast %169 : f32 to vector<2x256xf32>
      %171 = arith.mulf %170, %168 : vector<2x256xf32>
      %172 = arith.addf %164, %171 : vector<2x256xf32>
      %173 = arith.negf %172 : vector<2x256xf32>
      %174 = math.exp %173 : vector<2x256xf32>
      %cst_54 = arith.constant 1.000000e+00 : f32
      %175 = vector.broadcast %cst_54 : f32 to vector<2x256xf32>
      %176 = arith.addf %175, %174 : vector<2x256xf32>
      %177 = arith.divf %175, %176 : vector<2x256xf32>
      %178 = vector.shape_cast %177 : vector<2x256xf32> to vector<2x1x256xf32>
      %c0_55 = arith.constant 0 : index
      %c0_56 = arith.constant 0 : index
      %c0_57 = arith.constant 0 : index
      %179 = vector.load %arg4[%c0_55, %c0_56, %c0_57] : memref<2x1x256xf32, #tpu.memory_space<vmem>>, vector<2x1x256xf32>
      tpu.vector_store %arg4[%c0_55, %c0_56, %c0_57], %178 {strides = array<i32>} : memref<2x1x256xf32, #tpu.memory_space<vmem>>, vector<2x1x256xf32>,
    } else {
    }
    return
  }
  func.func @transform_0(%arg0: i32, %arg1: i32, %arg2: memref<18xf32, #tpu.memory_space<smem>>) -> (i32, i32, i32) {
    %c0_i32 = arith.constant 0 : i32
    %c0_i32_0 = arith.constant 0 : i32
    return %arg0, %arg1, %c0_i32 : i32, i32, i32
  }
  func.func @transform_1(%arg0: i32, %arg1: i32, %arg2: memref<18xf32, #tpu.memory_space<smem>>) -> (i32, i32, i32) {
    %c0_i32 = arith.constant 0 : i32
    %c0_i32_0 = arith.constant 0 : i32
    %c0_i32_1 = arith.constant 0 : i32
    return %arg0, %c0_i32, %c0_i32_0 : i32, i32, i32
  }
}

</mosaic_0001>

<bundles_post_ra>
// kernel: tpu_custom_call.1
= control target key start
LH: loop header
LB: loop body
LE: loop exit
PB: predicated region body
PF: predicated region fallthrough
CT: control target
= control target key end

     0   :  { %s1070_s0 = inlined_call_operand.hbm [shape: f32[18], index: 0, kind: input, shape index: {}]   ;;  %s1071_s1 = inlined_call_operand.hbm [shape: f32[2,4,256], index: 1, kind: input, shape index: {}]   ;;  %s1072_s2 = inlined_call_operand.hbm [shape: f32[2,1,256], index: 2, kind: output, shape index: {}]  }
   0x1   :  { %s612_s11 = scalar_lea.hbm %s1070_s0, 16 }
   0x2   :  { %p613_p0 = scmp.ne.s32.totalorder %s1070_s0, %s612_s11  ;;  %p616_p1 = scmp.lt.u32.totalorder %s612_s11, %s1070_s0 }
   0x4   :  { %p618_p2 = pnand %p616_p1, %p613_p0 }
   0x6   :  { %621 = shalt.err (!%p618_p2)  }
   0x7   :  { %s672_s16 = smov [#allocation5]  }
   0x8   :  { %8 = dma.hbm_to_smem %s1070_s0, 16, %s672_s16, [#allocation4] }
   0x9   :  { %666 = dma.done.wait [#allocation4], 16 }
   0xa   :  { %667 = vsyncadd [#allocation4], 4294967280 }
   0xb   :  { %10 = sfence }
   0xc   :  { %11 = vsyncpa [#allocation7], 0 }
   0xd   :  { %12 = vsyncpa [#allocation8], 0  ;;  %s673_s19 = smov [#allocation6]   ;;  %s622_s23 = scalar_lea.hbm %s1071_s1, 256 }
   0xe   :  { %s18_s20 = sshll.u32 %s673_s19, 4  ;;  %p623_p3 = scmp.ne.s32.totalorder %s1071_s1, %s622_s23  ;;  %s19_s20 = int_to_ptr.vmem [resolvable:$true] %s18_s20 }
   0xf   :  { %p626_p4 = scmp.lt.u32.totalorder %s622_s23, %s1071_s1 }
  0x11   :  { %p628_p5 = pnand %p626_p4, %p623_p3 }
  0x13   :  { %631 = shalt.err (!%p628_p5)
}
  0x14   :  { %s632_s0 = scalar_lea.vmem %s19_s20, 256  ;;  %p637_p7 = scmp.lt.s32.totalorder %s19_s20, %s19_s20 }
  0x15   :  { %p633_p6 = scmp.ne.s32.totalorder %s19_s20, %s632_s0  ;;  %p638_p8 = scmp.lt.s32.totalorder %s632_s0, %s632_s0 }
  0x17   :  { %p639_p9 = por %p638_p8, %p637_p7 }
  0x19   :  { %p640_p10 = pnand %p639_p9, %p633_p6 }
  0x1b   :  { %643 = shalt.err (!%p640_p10)
}
  0x1c   :  { %s674_s28 = smov 128   ;;  %s675_s29 = smov 8  }
  0x1d   :  { %24 = dma.hbm_to_vmem [thread:$0]  %s1071_s1, 256, %s19_s20, [#allocation7], %s674_s28, %s674_s28, %s675_s29  }
  0x1e   :  { %668 = dma.done.wait [#allocation7], 256  }
  0x1f   :  { %669 = vsyncadd [#allocation7], 4294967040  ;;  %v676_v0 = vmov 0.0   ;;  %v677_v1 = vmov -inf   ;;  %v678_v2 = vmov 1983009808   ;;  %v80_v4 = vlaneseq }
  0x20   :  { %32 = vst [vmem:[#allocation2] sm:$0xf] %v676_v0  ;;  %33 = vst [vmem:[#allocation3] sm:$0xf] %v677_v1  ;;  %v78_v3 = vunpack.c.l.s4 %v678_v2  ;;  %vm43_vm0 = vcmask 1043456   ;;  %v34_v5 = vld [vmem:[#allocation6] sm:$0xff] }
  0x21   :  { %v35_v6 = vld [vmem:[#allocation6 + $0x8] sm:$0xff]  ;;  %v731_v8 = vshrl.u32 %v80_v4, 7  ;;  %v39_v9 = vcombine.high %v34_v5, %v34_v5  ;;  %v44_v11 = vsel %vm43_vm0, %v34_v5, 0.0  ;;  %v109_v15 = vsel %vm43_vm0, %v34_v5, -inf  ;;  %s679_s1 = smov 16   ;;  %s680_s4 = smov 17  }
  0x22   :  { %v79_v7 = vunpack.c.0.s8 %v78_v3  ;;  %v40_v10 = vcombine.high %v35_v6, %v35_v6  ;;  %v58_v12 = vsel %vm43_vm0, %v35_v6, 0.0  ;;  %v45_v13 = vrot.slane %v44_v11, 4  ;;  %s681_s5 = smov 15   ;;  %s682_s6 = smov 1  }
  0x23   :  { %v59_v14 = vrot.slane %v58_v12, 4  ;;  %v123_v16 = vsel %vm43_vm0, %v35_v6, -inf  ;;  %v51_v17 = vsel %vm43_vm0, %v39_v9, 0.0  ;;  %v110_v19 = vrot.slane %v109_v15, 4  ;;  %s683_s7 = smov 127   ;;  %s567_s8 = sld [smem:[#allocation5 + $0x4]] }
  0x24   :  { %v65_v18 = vsel %vm43_vm0, %v40_v10, 0.0  ;;  %v116_v20 = vsel %vm43_vm0, %v39_v9, -inf  ;;  %v46_v21 = vadd.f32 %v45_v13, %v44_v11  ;;  %v52_v22 = vrot.slane %v51_v17, 4  ;;  %s684_s9 = smov 113   ;;  %s685_s10 = smov 112  }
  0x25   :  { %v60_v23 = vadd.f32 %v59_v14, %v58_v12  ;;  %v66_v24 = vrot.slane %v65_v18, 4  ;;  %v111_v25 = vmax.f32 %v109_v15, %v110_v19  ;;  %v117_v26 = vrot.slane %v116_v20, 4  ;;  %s686_s11 = smov 111   ;;  %s576_s12 = sld [smem:[#allocation5 + $0xd]] }
  0x26   :  { %v124_v27 = vrot.slane %v123_v16, 4  ;;  %v130_v28 = vsel %vm43_vm0, %v40_v10, -inf  ;;  %v47_v29 = vrot.slane %v46_v21, 2  ;;  %v53_v30 = vadd.f32 %v52_v22, %v51_v17  ;;  %s785_s13 = sld [smem:[#allocation5 + $0x1]]  ;;  %s790_s14 = sld [smem:[#allocation5 + $0x2]] }
  0x27   :  { %v61_v31 = vrot.slane %v60_v23, 2  ;;  %v67_v32 = vadd.f32 %v66_v24, %v65_v18  ;;  %v112_v33 = vrot.slane %v111_v25, 2  ;;  %v118_v34 = vmax.f32 %v116_v20, %v117_v26  ;;  %s794_s15 = sld [smem:[#allocation5 + $0x3]]  ;;  %s796_s16 = sld [smem:[#allocation5 + $0x5]] }
  0x28   :  { %v125_v35 = vmax.f32 %v123_v16, %v124_v27  ;;  %v131_v36 = vrot.slane %v130_v28, 4  ;;  %v48_v37 = vadd.f32 %v47_v29, %v46_v21  ;;  %v54_v38 = vrot.slane %v53_v30, 2  ;;  %v36_v16 = vld [vmem:[#allocation2] sm:$0xf]  ;;  %s798_s17 = sld [smem:[#allocation5]]  ;;  %s802_s18 = sld [smem:[#allocation5 + $0x6]] }
  0x29   :  { %v62_v39 = vadd.f32 %v61_v31, %v60_v23  ;;  %v68_v40 = vrot.slane %v67_v32, 2  ;;  %v113_v41 = vmax.f32 %v111_v25, %v112_v33  ;;  %v119_v42 = vrot.slane %v118_v34, 2  ;;  %v108_v23 = vld [vmem:[#allocation3] sm:$0xf]  ;;  %s804_s19 = sld [smem:[#allocation5 + $0x9]]  ;;  %s835_s20 = sld [smem:[#allocation5 + $0x7]] }
  0x2a   :  { %v126_v43 = vrot.slane %v125_v35, 2  ;;  %v132_v44 = vmax.f32 %v130_v28, %v131_v36  ;;  %v49_v45 = vrot.slane %v48_v37, 1  ;;  %v55_v46 = vadd.f32 %v54_v38, %v53_v30  ;;  %s855_s21 = sld [smem:[#allocation5 + $0xa]]  ;;  %s878_s22 = sld [smem:[#allocation5 + $0x8]] }
  0x2b   :  { %v63_v47 = vrot.slane %v62_v39, 1  ;;  %v69_v48 = vadd.f32 %v68_v40, %v67_v32  ;;  %v114_v49 = vrot.slane %v113_v41, 1  ;;  %v120_v50 = vmax.f32 %v118_v34, %v119_v42  ;;  %s880_s23 = sld [smem:[#allocation5 + $0xb]]  ;;  %s896_s24 = sld [smem:[#allocation5 + $0xc]] }
  0x2c   :  { %v127_v51 = vmax.f32 %v125_v35, %v126_v43  ;;  %v133_v52 = vrot.slane %v132_v44, 2  ;;  %v50_v53 = vadd.f32 %v49_v45, %v48_v37  ;;  %v56_v54 = vrot.slane %v55_v46, 1  ;;  %s978_s25 = sld [smem:[#allocation5 + $0xe]]  ;;  %s1001_s26 = sld [smem:[#allocation5 + $0xf]] }
  0x2d   :  { %v64_v55 = vadd.f32 %v63_v47, %v62_v39  ;;  %v70_v56 = vrot.slane %v69_v48, 1  ;;  %v115_v57 = vmax.f32 %v113_v41, %v114_v49  ;;  %v121_v58 = vrot.slane %v120_v50, 1  ;;  %s1003_s27 = sld [smem:[#allocation5 + $0x10]]  ;;  %s1028_s0 = sld [smem:[#allocation5 + $0x11]] }
  0x2e   :  { %v128_v59 = vrot.slane %v127_v51, 1  ;;  %v134_v60 = vmax.f32 %v132_v44, %v133_v52  ;;  %v57_v61 = vadd.f32 %v56_v54, %v55_v46  ;;  %v742_v63 = vsub.s32 %v79_v7, %v731_v8  ;;  %s688_s28 = smov [#allocation9]  }
  0x2f   :  { %v71_v62 = vadd.f32 %v70_v56, %v69_v48  ;;  %v122_v0 = vmax.f32 %v120_v50, %v121_v58  ;;  %vm97_vm1 = vcmask 1041409   ;;  %vm99_vm2 = vcmask 1043459   ;;  %s552_s29 = sshll.u32 %s688_s28, 4  ;;  %s553_s29 = int_to_ptr.vmem [resolvable:$true] %s552_s29 }
  0x30   :  { %v129_v1 = vmax.f32 %v127_v51, %v128_v59  ;;  %v135_v2 = vrot.slane %v134_v60, 1  ;;  %v76_v3 = vcombine.low %v50_v53, %v57_v61  ;;  %vm101_vm3 = vcmask 1045509   ;;  %s644_s30 = scalar_lea.vmem %s553_s29, 64  ;;  %p649_p12 = scmp.lt.s32.totalorder %s553_s29, %s553_s29 }
  0x31   :  { %v84_v5 = vcombine.low %v64_v55, %v71_v62  ;;  %v141_v9 = vcombine.low %v115_v57, %v122_v0  ;;  %vm103_vm4 = vcmask 1047559   ;;  %v284_v35 = vstv %s567_s8  ;;  %p645_p11 = scmp.ne.s32.totalorder %s553_s29, %s644_s30  ;;  %p650_p13 = scmp.lt.s32.totalorder %s644_s30, %s644_s30 }
  0x32   :  { %v136_v6 = vmax.f32 %v134_v60, %v135_v2  ;;  %v83_v10 = vrot.slane %v76_v3, %v742_v63  ;;  %v431_v38 = vstv %s576_s12  ;;  %v779_v47 = vand.u32 127, %v80_v4 }
  0x33   :  { %v91_v11 = vrot.slane %v84_v5, %v742_v63  ;;  %v148_v14 = vrot.slane %v141_v9, %v742_v63  ;;  %v246_v57 = vstv %s785_s13  ;;  %v263_v60 = vstv %s790_s14  ;;  %p651_p0 = por %p650_p13, %p649_p12 }
  0x34   :  { %v149_v12 = vcombine.low %v129_v1, %v136_v6  ;;  %v788_v50 = vadd.s32 128, %v779_v47  ;;  %v180_v53 = vand.u32 15, %v779_v47  ;;  %vm240_vm5 = vcmp.lt.s32.totalorder %v779_v47, 16 }
  0x35   :  { %v96_v13 = vrot.slane %v91_v11, 7  ;;  %vm200_vm6 = vcmp.ge.s32.totalorder %v779_v47, 16  ;;  %vm255_vm9 = vcmp.lt.s32.totalorder %v779_v47, 15  ;;  %vm272_vm12 = vcmp.lt.s32.totalorder %v779_v47, 1  ;;  %p652_p1 = pnand %p651_p0, %p645_p11 }
  0x36   :  { %v156_v7 = vrot.slane %v149_v12, %v742_v63  ;;  %v187_v54 = vand.u32 15, %v788_v50  ;;  %vm811_vm7 = vcmp.le.s32.totalorder %v180_v53, 14  ;;  %vm821_vm10 = vcmp.ge.s32.totalorder %v180_v53, 1 }
  0x37   :  { %v98_v15 = vsel %vm97_vm1, %v96_v13, %v83_v10  ;;  %v278_v1 = vstv %s794_s15  ;;  %vm1073_vm13 = vcmp.lt.s32.totalorder %v779_v47, 127  ;;  %v309_v3 = vstv %s796_s16  ;;  %vm847_vm15 = vmand %vm200_vm6, %vm811_vm7 }
  0x38   :  { %v100_v17 = vsel %vm99_vm2, %v96_v13, %v98_v15  ;;  %v159_v18 = vrot.slane %v156_v7, 7  ;;  %vm815_vm8 = vcmp.le.s32.totalorder %v187_v54, 14  ;;  %vm829_vm11 = vcmp.ge.s32.totalorder %v187_v54, 1 }
  0x39   :  { %v102_v19 = vsel %vm101_vm3, %v96_v13, %v100_v17  ;;  %vm223_vm14 = vcmp.lt.s32.totalorder %v779_v47, 17  ;;  %v231_v5 = vstv %s798_s17  ;;  %vm203_vm0 = vcmp.lt.s32.totalorder %v788_v50, 240 }
  0x3a   :  { %v104_v20 = vsel %vm103_vm4, %v96_v13, %v102_v19  ;;  %v160_v21 = vsel %vm97_vm1, %v159_v18, %v148_v14  ;;  %vm1074_vm1 = vcmp.lt.s32.totalorder %v779_v47, 113  ;;  %v326_v14 = vstv %s802_s18 }
  0x3b   :  { %v106_v22 = vadd.f32 %v104_v20, %v36_v16  ;;  %v161_v24 = vsel %vm99_vm2, %v159_v18, %v160_v21  ;;  %vm865_vm2 = vmand %vm200_vm6, %vm821_vm10  ;;  %v383_v7 = vstv %s804_s19  ;;  %v397_v54 = vstv %s855_s21 }
  0x3c   :  { %v162_v25 = vsel %vm101_vm3, %v159_v18, %v161_v24  ;;  %vm335_vm3 = vcmp.lt.s32.totalorder %v779_v47, 112  ;;  %v687_v58 = vmov 1966171168  }
  0x3d   :  { %107 = vst [vmem:[#allocation2] sm:$0xf] %v106_v22  ;;  %v163_v26 = vsel %vm103_vm4, %v159_v18, %v162_v25  ;;  %vm916_vm4 = vmand %vm203_vm0, %vm829_vm11 }
  0x3e   :  { %v165_v27 = vmax.f32 %v108_v23, %v163_v26 }
  0x40   :  { %166 = vst [vmem:[#allocation3] sm:$0xf] %v165_v27 }
  0x44   :  { %v170_v28 = vld [vmem:[#allocation2] sm:$0xf] }
  0x45   :  { %v171_v29 = vmul.f32 0.25, %v170_v28 }
  0x47   :  { %v215_v30 = vrot.slane %v171_v29, %v742_v63  ;;  %v172_v31 = vld [vmem:[#allocation3] sm:$0xf]  ;;  %v285_v36 = vmul.f32 %v284_v35, %v171_v29 }
  0x48   :  { %v370_v32 = vrot.slane %v172_v31, %v742_v63  ;;  %v432_v39 = vmul.f32 %v431_v38, %v172_v31  ;;  %v341_v38 = vstv %s835_s20 }
  0x49   :  { %236 = vrot.lane.b32.xlu1 %v215_v30, %s679_s1  ;;  %219 = vrot.lane.b32.xlu0 %v215_v30, %s680_s4  ;;  %v216_v34 = vcombine.high %v215_v30, %v215_v30  ;;  %v759_v37 = vrot.slane %v285_v36, %v742_v63 }
  0x4a   :  { %v371_v33 = vcombine.high %v370_v32, %v370_v32  ;;  %v766_v40 = vrot.slane %v432_v39, %v742_v63 }
  0x4b   :  { %v294_v19 = vcombine.high %v759_v37, %v759_v37 }
  0x4d   :  { %376 = vrot.lane.b32.xlu1 %v371_v33, %s680_s4  ;;  %251 = vrot.lane.b32.xlu0 %v215_v30, %s681_s5 }
  0x51   :  { %390 = vrot.lane.b32.xlu1 %v371_v33, %s679_s1  ;;  %268 = vrot.lane.b32.xlu0 %v215_v30, %s682_s6 }
  0x55   :  { %404 = vrot.lane.b32.xlu1 %v371_v33, %s681_s5  ;;  %299 = vrot.lane.b32.xlu0 %v215_v30, %s683_s7 }
  0x59   :  { %314 = vrot.lane.b32.xlu0 %v215_v30, %s684_s9  ;;  %238 = vrot.lane.b32.xlu1 %v216_v34, %s679_s1 }
  0x5d   :  { %331 = vrot.lane.b32.xlu0 %v215_v30, %s685_s10  ;;  %253 = vrot.lane.b32.xlu1 %v216_v34, %s681_s5 }
  0x61   :  { %346 = vrot.lane.b32.xlu0 %v215_v30, %s686_s11  ;;  %270 = vrot.lane.b32.xlu1 %v216_v34, %s682_s6 }
  0x65   :  { %301 = vrot.lane.b32.xlu1 %v216_v34, %s683_s7  ;;  %221 = vrot.lane.b32.xlu0 %v216_v34, %s680_s4 }
  0x69   :  { %316 = vrot.lane.b32.xlu1 %v216_v34, %s684_s9  ;;  %374 = vrot.lane.b32.xlu0 %v370_v32, %s680_s4 }
  0x6d   :  { %333 = vrot.lane.b32.xlu1 %v216_v34, %s685_s10  ;;  %388 = vrot.lane.b32.xlu0 %v370_v32, %s679_s1 }
  0x71   :  { %348 = vrot.lane.b32.xlu1 %v216_v34, %s686_s11  ;;  %402 = vrot.lane.b32.xlu0 %v370_v32, %s681_s5 }
  0x75   :  { %418 = vrot.lane.b32.xlu1 %v371_v33, %s682_s6  ;;  %416 = vrot.lane.b32.xlu0 %v370_v32, %s682_s6 }
  0x79   :  { %448 = vrot.lane.b32.xlu1 %v371_v33, %s683_s7  ;;  %446 = vrot.lane.b32.xlu0 %v370_v32, %s683_s7 }
  0x7d   :  { %462 = vrot.lane.b32.xlu1 %v371_v33, %s684_s9  ;;  %460 = vrot.lane.b32.xlu0 %v370_v32, %s684_s9 }
  0x81   :  { %476 = vrot.lane.b32.xlu1 %v371_v33, %s685_s10  ;;  %474 = vrot.lane.b32.xlu0 %v370_v32, %s685_s10 }
  0x85   :  { %490 = vrot.lane.b32.xlu1 %v371_v33, %s686_s11  ;;  %488 = vrot.lane.b32.xlu0 %v370_v32, %s686_s11 }
  0xbb   :  { %v237_v41 = vpop.permute.xlu1 %236  ;;  %v772_v42 = vpop.permute.xlu0 %219 }
  0xbf   :  { %v774_v43 = vpop.permute.xlu1 %376  ;;  %v252_v44 = vpop.permute.xlu0 %251 }
  0xc3   :  { %v776_v45 = vpop.permute.xlu1 %390  ;;  %v269_v46 = vpop.permute.xlu0 %268 }
  0xc7   :  { %v781_v48 = vpop.permute.xlu1 %404  ;;  %v783_v49 = vpop.permute.xlu0 %299 }
  0xcb   :  { %v792_v51 = vpop.permute.xlu0 %314  ;;  %v239_v52 = vpop.permute.xlu1 %238 }
  0xcc   :  { %v242_v62 = vsel %vm240_vm5, %v239_v52, %v237_v41  ;;  %v241_v6 = vsel %vm240_vm5, %v237_v41, %v239_v52 }
  0xcd   :  { %v243_v11 = vsel %vm200_vm6, %v242_v62, 0.0  ;;  %v248_v20 = vmul.f32 %v246_v57, %v241_v6  ;;  %v411_v6 = vstv %s880_s23 }
  0xce   :  { %v247_v24 = vmul.f32 %v246_v57, %v243_v11 }
  0xcf   :  { %v806_v55 = vpop.permute.xlu0 %331  ;;  %v254_v56 = vpop.permute.xlu1 %253 }
  0xd0   :  { %v257_v10 = vsel %vm255_vm9, %v254_v56, %v252_v44  ;;  %v256_v12 = vsel %vm255_vm9, %v252_v44, %v254_v56 }
  0xd1   :  { %v260_v21 = vsel %vm847_vm15, %v257_v10, 0.0  ;;  %v261_v25 = vsel %vm815_vm8, %v256_v12, 0.0 }
  0xd2   :  { %v264_v32 = vmul.f32 %v263_v60, %v260_v21  ;;  %v265_v39 = vmul.f32 %v263_v60, %v261_v25 }
  0xd3   :  { %v827_v63 = vpop.permute.xlu0 %346  ;;  %v271_v2 = vpop.permute.xlu1 %270 }
  0xd4   :  { %v273_v15 = vsel %vm272_vm12, %v269_v46, %v271_v2  ;;  %v274_v16 = vsel %vm272_vm12, %v271_v2, %v269_v46 }
  0xd5   :  { %v275_v28 = vsel %vm821_vm10, %v274_v16, 0.0  ;;  %v276_v29 = vsel %vm829_vm11, %v273_v15, 0.0 }
  0xd6   :  { %v279_v46 = vmul.f32 %v278_v1, %v275_v28  ;;  %v280_v52 = vmul.f32 %v278_v1, %v276_v29 }
  0xd7   :  { %v302_v17 = vpop.permute.xlu1 %301  ;;  %v222_v18 = vpop.permute.xlu0 %221 }
  0xd8   :  { %v224_v22 = vsel %vm223_vm14, %v772_v42, %v222_v18  ;;  %v225_v23 = vsel %vm223_vm14, %v222_v18, %v772_v42  ;;  %v304_v33 = vsel %vm1073_vm13, %v783_v49, %v302_v17  ;;  %v305_v34 = vsel %vm1073_vm13, %v302_v17, %v783_v49 }
  0xd9   :  { %v228_v26 = vsel %vm865_vm2, %v225_v23, 0.0  ;;  %v229_v27 = vsel %vm829_vm11, %v224_v22, 0.0  ;;  %v306_v56 = vsel %vm811_vm7, %v304_v33, 0.0  ;;  %v307_v57 = vsel %vm815_vm8, %v305_v34, 0.0 }
  0xda   :  { %v232_v30 = vmul.f32 %v231_v5, %v228_v26  ;;  %v233_v31 = vmul.f32 %v231_v5, %v229_v27  ;;  %vm350_vm13 = vcmp.lt.s32.totalorder %v779_v47, 111  ;;  %v310_v16 = vmul.f32 %v309_v3, %v306_v56 }
  0xdb   :  { %v317_v35 = vpop.permute.xlu1 %316  ;;  %v375_v36 = vpop.permute.xlu0 %374  ;;  %v311_v17 = vmul.f32 %v309_v3, %v307_v57 }
  0xdc   :  { %v249_v41 = vadd.f32 %v247_v24, %v232_v30  ;;  %v250_v42 = vadd.f32 %v248_v20, %v233_v31  ;;  %v319_v44 = vsel %vm1074_vm1, %v792_v51, %v317_v35  ;;  %v320_v53 = vsel %vm1074_vm1, %v317_v35, %v792_v51  ;;  %vm961_vm1 = vmand %vm203_vm0, %vm815_vm8 }
  0xdd   :  { %v323_v1 = vsel %vm821_vm10, %v319_v44, 0.0  ;;  %v358_v51 = vstv %s878_s22  ;;  %v324_v12 = vsel %vm916_vm4, %v320_v53, 0.0  ;;  %v379_v15 = vsel %vm223_vm14, %v774_v43, %v375_v36 }
  0xde   :  { %v266_v60 = vadd.f32 %v264_v32, %v249_v41  ;;  %v267_v62 = vadd.f32 %v265_v39, %v250_v42  ;;  %v425_v20 = vstv %s896_s24  ;;  %v378_v23 = vsel %vm223_vm14, %v375_v36, %v774_v43 }
  0xdf   :  { %v334_v2 = vpop.permute.xlu1 %333  ;;  %v389_v5 = vpop.permute.xlu0 %388  ;;  %v327_v25 = vmul.f32 %v326_v14, %v323_v1  ;;  %v328_v26 = vmul.f32 %v326_v14, %v324_v12  ;;  %v380_v3 = vsel %vm865_vm2, %v379_v15, 0.0  ;;  %v381_v29 = vsel %vm829_vm11, %v378_v23, 0.0 }
  0xe0   :  { %v281_v10 = vadd.f32 %v279_v46, %v266_v60  ;;  %v282_v11 = vadd.f32 %v280_v52, %v267_v62  ;;  %v337_v18 = vsel %vm335_vm3, %v334_v2, %v806_v55  ;;  %v336_v24 = vsel %vm335_vm3, %v806_v55, %v334_v2 }
  0xe1   :  { %v339_v27 = vsel %vm203_vm0, %v337_v18, 0.0  ;;  %v393_v13 = vsel %vm240_vm5, %v776_v45, %v389_v5  ;;  %v342_v30 = vmul.f32 %v341_v38, %v336_v24  ;;  %v392_v39 = vsel %vm240_vm5, %v389_v5, %v776_v45 }
  0xe2   :  { %v297_v21 = vadd.f32 %v759_v37, %v281_v10  ;;  %v298_v22 = vadd.f32 %v294_v19, %v282_v11  ;;  %v343_v35 = vmul.f32 %v341_v38, %v339_v27  ;;  %v384_v57 = vmul.f32 %v383_v7, %v380_v3 }
  0xe3   :  { %v349_v43 = vpop.permute.xlu1 %348  ;;  %v403_v19 = vpop.permute.xlu0 %402  ;;  %v385_v45 = vmul.f32 %v383_v7, %v381_v29  ;;  %v399_v2 = vmul.f32 %v397_v54, %v392_v39  ;;  %vm1091_vm5 = vcmp.lt.s32.totalorder %v779_v47, 127  ;;  %v441_v18 = vcombine.high %v766_v40, %v766_v40 }
  0xe4   :  { %v312_v28 = vadd.f32 %v310_v16, %v297_v21  ;;  %v313_v55 = vadd.f32 %v311_v17, %v298_v22  ;;  %v351_v14 = vsel %vm350_vm13, %v827_v63, %v349_v43  ;;  %v352_v31 = vsel %vm350_vm13, %v349_v43, %v827_v63 }
  0xe5   :  { %v355_v32 = vsel %vm811_vm7, %v351_v14, 0.0  ;;  %v356_v36 = vsel %vm961_vm1, %v352_v31, 0.0  ;;  %v394_v63 = vsel %vm200_vm6, %v393_v13, 0.0  ;;  %v406_v41 = vsel %vm255_vm9, %v403_v19, %v781_v48  ;;  %vm1092_vm6 = vmmov %vm1091_vm5 }
  0xe6   :  { %v329_v33 = vadd.f32 %v327_v25, %v312_v28  ;;  %v330_v34 = vadd.f32 %v328_v26, %v313_v55  ;;  %v407_v42 = vsel %vm255_vm9, %v781_v48, %v403_v19  ;;  %v359_v53 = vmul.f32 %v358_v51, %v355_v32 }
  0xe7   :  { %v419_v44 = vpop.permute.xlu1 %418  ;;  %v417_v38 = vpop.permute.xlu0 %416  ;;  %v360_v56 = vmul.f32 %v358_v51, %v356_v36  ;;  %v398_v1 = vmul.f32 %v397_v54, %v394_v63  ;;  %v408_v7 = vsel %vm847_vm15, %v407_v42, 0.0  ;;  %v409_v51 = vsel %vm815_vm8, %v406_v41, 0.0 }
  0xe8   :  { %v344_v46 = vadd.f32 %v342_v30, %v329_v33  ;;  %v345_v52 = vadd.f32 %v343_v35, %v330_v34  ;;  %v420_v60 = vsel %vm272_vm12, %v417_v38, %v419_v44  ;;  %v421_v62 = vsel %vm272_vm12, %v419_v44, %v417_v38 }
  0xe9   :  { %v422_v10 = vsel %vm821_vm10, %v421_v62, 0.0  ;;  %v423_v54 = vsel %vm829_vm11, %v420_v60, 0.0  ;;  %v455_v21 = vstv %s978_s25  ;;  %v412_v0 = vmul.f32 %v411_v6, %v408_v7 }
  0xea   :  { %v361_v48 = vadd.f32 %v359_v53, %v344_v46  ;;  %v362_v5 = vadd.f32 %v360_v56, %v345_v52  ;;  %v413_v24 = vmul.f32 %v411_v6, %v409_v51  ;;  %v426_v25 = vmul.f32 %v425_v20, %v422_v10 }
  0xeb   :  { %v449_v11 = vpop.permute.xlu1 %448  ;;  %v447_v12 = vpop.permute.xlu0 %446  ;;  %v427_v26 = vmul.f32 %v425_v20, %v423_v54  ;;  %vm1093_vm9 = vcmp.lt.s32.totalorder %v779_v47, 113  ;;  %v469_v29 = vstv %s1001_s26  ;;  %v483_v30 = vstv %s1003_s27 }
  0xec   :  { %v386_v15 = vadd.f32 %v384_v57, %v361_v48  ;;  %v387_v16 = vadd.f32 %v385_v45, %v362_v5  ;;  %v450_v17 = vsel %vm1091_vm5, %v447_v12, %v449_v11  ;;  %v451_v9 = vsel %vm1092_vm6, %v449_v11, %v447_v12  ;;  %vm1094_vm11 = vmmov %vm1093_vm9 }
  0xed   :  { %v452_v3 = vsel %vm811_vm7, %v450_v17, 0.0  ;;  %v453_v27 = vsel %vm815_vm8, %v451_v9, 0.0  ;;  %v497_v56 = vstv %s1028_s0  ;;  %v518_v17 = vunpack.c.l.s4 %v687_v58 }
  0xee   :  { %v400_v22 = vadd.f32 %v398_v1, %v386_v15  ;;  %v401_v23 = vadd.f32 %v399_v2, %v387_v16  ;;  %v456_v31 = vmul.f32 %v455_v21, %v452_v3  ;;  %v457_v32 = vmul.f32 %v455_v21, %v453_v27 }
  0xef   :  { %v463_v43 = vpop.permute.xlu1 %462  ;;  %v461_v19 = vpop.permute.xlu0 %460  ;;  %v519_v37 = vunpack.c.0.s8 %v518_v17 }
  0xf0   :  { %v414_v28 = vadd.f32 %v412_v0, %v400_v22  ;;  %v415_v55 = vadd.f32 %v413_v24, %v401_v23  ;;  %v464_v13 = vsel %vm1093_vm9, %v461_v19, %v463_v43  ;;  %v465_v6 = vsel %vm1094_vm11, %v463_v43, %v461_v19 }
  0xf1   :  { %v466_v59 = vsel %vm821_vm10, %v464_v13, 0.0  ;;  %v467_v33 = vsel %vm916_vm4, %v465_v6, 0.0 }
  0xf2   :  { %v428_v14 = vadd.f32 %v426_v25, %v414_v28  ;;  %v429_v20 = vadd.f32 %v427_v26, %v415_v55  ;;  %v470_v38 = vmul.f32 %v469_v29, %v466_v59  ;;  %v471_v49 = vmul.f32 %v469_v29, %v467_v33 }
  0xf3   :  { %v477_v34 = vpop.permute.xlu1 %476  ;;  %v475_v35 = vpop.permute.xlu0 %474 }
  0xf4   :  { %v444_v36 = vadd.f32 %v766_v40, %v428_v14  ;;  %v445_v39 = vadd.f32 %v441_v18, %v429_v20  ;;  %v478_v63 = vsel %vm335_vm3, %v475_v35, %v477_v34  ;;  %v479_v41 = vsel %vm335_vm3, %v477_v34, %v475_v35 }
  0xf5   :  { %v481_v42 = vsel %vm203_vm0, %v479_v41, 0.0  ;;  %v484_v46 = vmul.f32 %v483_v30, %v478_v63  ;;  %v522_v18 = vsub.s32 %v519_v37, %v731_v8 }
  0xf6   :  { %v458_v61 = vadd.f32 %v456_v31, %v444_v36  ;;  %v459_v44 = vadd.f32 %v457_v32, %v445_v39  ;;  %v485_v52 = vmul.f32 %v483_v30, %v481_v42 }
  0xf7   :  { %v491_v53 = vpop.permute.xlu1 %490  ;;  %v489_v57 = vpop.permute.xlu0 %488 }
  0xf8   :  { %v472_v40 = vadd.f32 %v470_v38, %v458_v61  ;;  %v473_v45 = vadd.f32 %v471_v49, %v459_v44  ;;  %v492_v60 = vsel %vm350_vm13, %v489_v57, %v491_v53  ;;  %v493_v62 = vsel %vm350_vm13, %v491_v53, %v489_v57 }
  0xf9   :  { %v494_v50 = vsel %vm811_vm7, %v492_v60, 0.0  ;;  %v495_v1 = vsel %vm961_vm1, %v493_v62, 0.0  ;;  %vm543_vm7 = vcmp.lt.s32.totalorder %v80_v4, 256 }
  0xfa   :  { %v486_v2 = vadd.f32 %v484_v46, %v472_v40  ;;  %v487_v48 = vadd.f32 %v485_v52, %v473_v45  ;;  %v498_v5 = vmul.f32 %v497_v56, %v494_v50  ;;  %v499_v7 = vmul.f32 %v497_v56, %v495_v1 }
  0xfc   :  { %v500_v51 = vadd.f32 %v498_v5, %v486_v2  ;;  %v501_v10 = vadd.f32 %v499_v7, %v487_v48 }
  0xfe   :  { %v581_v54 = vmul.f32 -1.442695, %v500_v51  ;;  %v582_v11 = vmul.f32 -1.442695, %v501_v10 }
 0x100   :  { %604 = vpow2.f32 %v581_v54 }
 0x101   :  { %606 = vpow2.f32 %v582_v11 }
 0x10a   :  { %v605_v12 = vpop.eup %604 }
 0x10b   :  { %v607_v15 = vpop.eup %606  ;;  %v508_v47 = vadd.f32 1.0, %v605_v12 }
 0x10c   :  { %v509_v16 = vadd.f32 1.0, %v607_v15 }
 0x10d   :  { %608 = vrcp.f32 %v508_v47 }
 0x10e   :  { %610 = vrcp.f32 %v509_v16 }
 0x117   :  { %v609_v9 = vpop.eup %608 }
 0x118   :  { %v611_v21 = vpop.eup %610 }
 0x119   :  { %v516_v22 = vcombine.low %v609_v9, %v611_v21 }
 0x11b   :  { %v523_v23 = vrot.slane %v516_v22, %v522_v18 }
 0x11d   :  { %v524_v0 = vcombine.high %v523_v23, %v523_v23  ;;  %v531_v24 = vrot.slane %v523_v23, %v522_v18 }
 0x11f   :  { %v538_v25 = vrot.slane %v524_v0, %v522_v18  ;;  %545 = vst.msk [vmem:[#allocation9] sm:$0x3] %vm543_vm7, %v531_v24 }
 0x121   :  { %546 = vst.msk [vmem:[#allocation9 + $0x2] sm:$0x3] %vm543_vm7, %v538_v25 }
 0x122   :  { %655 = shalt.err (!%p652_p1)
}
 0x123   :  { %s656_s4 = scalar_lea.hbm %s1072_s2, 64 }
 0x124   :  { %p657_p2 = scmp.ne.s32.totalorder %s1072_s2, %s656_s4  ;;  %p660_p3 = scmp.lt.u32.totalorder %s656_s4, %s1072_s2 }
 0x126   :  { %p662_p4 = pnand %p660_p3, %p657_p2 }
 0x128   :  { %665 = shalt.err (!%p662_p4)
}
 0x129   :  { %s689_s9 = smov 32   ;;  %s690_s10 = smov 2  }
 0x12a   :  { %558 = dma.vmem_to_hbm [thread:$0]  %s553_s29, 64, %s1072_s2, [#allocation8], %s689_s9, %s689_s9, %s690_s10  }
 0x12b   :  { %670 = dma.done.wait [#allocation8], 64  }
 0x12c   :  { %671 = vsyncadd [#allocation8], 4294967232 }
 0x12d   :  { %562 = vsyncpa [#allocation7], 1 }
 0x12e   :  { %563 = vsyncpa [#allocation8], 1 }

</bundles_post_ra>
